<compile_context>
chip_gen: v6e
topology: v6e:2x2x1
jax: 0.10.0
libtpu: 0.0.40
codegen_flags: <defaults>
</compile_context>

<pallas_src>
import numpy as np
import jax
import jax.numpy as jnp
from jax.experimental import pallas as pl
from jax.experimental.pallas import tpu as pltpu


# -----------------------------------------------------------------------------
# Noise schedule (glue; mirrors make_beta_schedule('linear', ...) + cumprod)
# -----------------------------------------------------------------------------
def make_linear_schedule(timesteps=1000, linear_start=1e-4, linear_end=2e-2):
    betas = (
        np.linspace(linear_start ** 0.5, linear_end ** 0.5, timesteps,
                    dtype=np.float64) ** 2
    )
    alphas = 1.0 - betas
    alphas_cumprod = np.cumprod(alphas, axis=0)
    sqrt_alphas_cumprod = np.sqrt(alphas_cumprod).astype(np.float32)
    sqrt_one_minus_alphas_cumprod = np.sqrt(1.0 - alphas_cumprod).astype(np.float32)
    return jnp.asarray(sqrt_alphas_cumprod), jnp.asarray(sqrt_one_minus_alphas_cumprod)


def _sublane_multiple(dtype):
    """Sublane packing multiple for a dtype: 8 (f32), 16 (bf16/f16), 32 (int8/fp8)."""
    itemsize = jnp.dtype(dtype).itemsize
    return max(8, 32 // max(int(itemsize), 1))


# -----------------------------------------------------------------------------
# Pallas kernel
#   grid = (B, n_row_tiles); x/noise/out blocks are (tile_rows, 128) lane-dense slabs
#   of one batch element; the two per-batch coefficients are scalar-prefetched (SMEM)
#   so the whole body is a single fused scale-add: z = sa*x + soma*noise.
# -----------------------------------------------------------------------------
def _cond_noise_kernel(sa_ref, soma_ref, x_ref, n_ref, o_ref):
    b = pl.program_id(0)
    sa = sa_ref[b]          # sqrt(alphas_cumprod)[t_b]        (SMEM scalar)
    soma = soma_ref[b]      # sqrt(1 - alphas_cumprod)[t_b]    (SMEM scalar)

    x = x_ref[...].astype(jnp.float32)
    n = n_ref[...].astype(jnp.float32)
    o_ref[...] = (sa * x + soma * n).astype(o_ref.dtype)


def condition_noise_pallas(x, sa_b, soma_b, noise=None, *, key=None,
                           max_tile_rows=1024):
    """z = sa_b[b] * x[b] + soma_b[b] * noise[b], fused on TPU.

    x: (B, ...) float array.  sa_b / soma_b: (B,) float32 per-batch coefficients.
    noise: optional array with x's shape; if None, drawn from `key` ~ N(0, 1).
    """
    orig_shape = x.shape
    dtype = x.dtype
    B = orig_shape[0]
    L = int(np.prod(orig_shape[1:]))

    WL = 128
    rows = -(-L // WL)                      # ceil(L / 128)
    Lp = rows * WL

    # x: pad only the minor dim up to a multiple of 128 (nothing more).
    x_flat = x.reshape(B, L)
    if Lp != L:
        x_flat = jnp.pad(x_flat, ((0, 0), (0, Lp - L)))
    x3 = x_flat.reshape(B, rows, WL)

    # noise: generated directly at the padded (B, rows, 128) shape (no pad pass),
    # or reshaped/padded from a user-supplied tensor of x's shape.
    if noise is None:
        assert key is not None, "need a PRNG key when noise is not supplied"
        noise3 = jax.random.normal(key, (B, rows, WL), dtype=dtype)
    else:
        n_flat = jnp.asarray(noise, dtype=dtype).reshape(B, L)
        if Lp != L:
            n_flat = jnp.pad(n_flat, ((0, 0), (0, Lp - L)))
        noise3 = n_flat.reshape(B, rows, WL)

    # Tile rows: full extent if small, else a dtype-aligned cap (~512 KiB f32 blocks).
    sub = _sublane_multiple(dtype)
    if rows <= max_tile_rows:
        tile_rows = rows                    # full second-to-last dim: always legal
    else:
        tile_rows = max((max_tile_rows // sub) * sub, sub)
    n_tiles = -(-rows // tile_rows)         # Pallas masks the ragged edge block

    data_spec = pl.BlockSpec((None, tile_rows, WL), lambda b, i, *_: (b, i, 0))

    out = pl.pallas_call(
        _cond_noise_kernel,
        out_shape=jax.ShapeDtypeStruct((B, rows, WL), dtype),
        grid_spec=pltpu.PrefetchScalarGridSpec(
            num_scalar_prefetch=2,          # sa_b, soma_b -> SMEM scalars
            grid=(B, n_tiles),
            in_specs=[data_spec, data_spec],
            out_specs=data_spec,
        ),
        compiler_params=pltpu.CompilerParams(
            dimension_semantics=("parallel", "parallel"),
            vmem_limit_bytes=32 * 1024 * 1024,
        ),
    )(
        sa_b.astype(jnp.float32),
        soma_b.astype(jnp.float32),
        x3,
        noise3,
    )

    z = out.reshape(B, Lp)
    if Lp != L:
        z = z[:, :L]
    return z.reshape(orig_shape)


# -----------------------------------------------------------------------------
# ConditionNoise forward
# -----------------------------------------------------------------------------
class ConditionNoiseJAX:
    def __init__(self, timesteps=1000, linear_start=1e-4, linear_end=2e-2,
                 max_noise_level=1000):
        self.num_timesteps = int(timesteps)
        self.max_noise_level = max_noise_level
        self.sqrt_alphas_cumprod, self.sqrt_one_minus_alphas_cumprod = (
            make_linear_schedule(timesteps, linear_start, linear_end)
        )

    def __call__(self, x, key, noise_level=None, noise=None):
        B = x.shape[0]
        k_t, k_n = jax.random.split(key)
        if noise_level is None:
            noise_level = jax.random.randint(
                k_t, (B,), 0, self.max_noise_level, dtype=jnp.int32)
        else:
            noise_level = jnp.asarray(noise_level, dtype=jnp.int32)
        # Clamp so a bad timestep can never read past the schedule tables.
        t = jnp.clip(noise_level, 0, self.num_timesteps - 1)
        # extract_into_tensor: gather the two per-batch coefficients outside the
        # kernel; they travel as (B,) scalar-prefetch args.
        sa_b = jnp.take(self.sqrt_alphas_cumprod, t)
        soma_b = jnp.take(self.sqrt_one_minus_alphas_cumprod, t)
        return condition_noise_pallas(x, sa_b, soma_b, noise=noise, key=k_n)


if __name__ == "__main__":
    key = jax.random.PRNGKey(0)
    k_x, k_fwd, k_noise = jax.random.split(key, 3)

    B, C, H, W = 2, 4, 16, 16
    x = jax.random.normal(k_x, (B, C, H, W), dtype=jnp.float32)

    model = ConditionNoiseJAX(timesteps=1000, linear_start=1e-4,
                              linear_end=2e-2, max_noise_level=1000)

    # 1) Random-noise-level path (matches the torch forward with noise_level=None).
    z_rand = model(x, k_fwd)
    jax.block_until_ready(z_rand)
    assert z_rand.shape == x.shape and z_rand.dtype == x.dtype
    assert bool(jnp.all(jnp.isfinite(z_rand)))

    # 2) Explicit noise_level + explicit noise: exact reference check of q_sample.
    t = jnp.array([3, 871], dtype=jnp.int32)
    noise = jax.random.normal(k_noise, x.shape, dtype=jnp.float32)
    z = model(x, k_fwd, noise_level=t, noise=noise)
    jax.block_until_ready(z)

    sa = np.asarray(model.sqrt_alphas_cumprod)[np.asarray(t)].reshape(B, 1, 1, 1)
    soma = np.asarray(model.sqrt_one_minus_alphas_cumprod)[np.asarray(t)].reshape(B, 1, 1, 1)
    ref = sa * np.asarray(x) + soma * np.asarray(noise)
    np.testing.assert_allclose(np.asarray(z), ref, rtol=1e-5, atol=1e-5)

    # 3) Statistical check on the default (random-noise) path:
    #    implied_noise = (z - sa*x) / soma should be ~N(0, 1) per batch element.
    t2 = jnp.array([100, 900], dtype=jnp.int32)
    z2 = model(x, k_fwd, noise_level=t2)
    jax.block_until_ready(z2)
    sa2 = np.asarray(model.sqrt_alphas_cumprod)[np.asarray(t2)].reshape(B, 1, 1, 1)
    soma2 = np.asarray(model.sqrt_one_minus_alphas_cumprod)[np.asarray(t2)].reshape(B, 1, 1, 1)
    implied = (np.asarray(z2) - sa2 * np.asarray(x)) / soma2
    assert np.isfinite(implied).all()
    assert abs(implied.mean()) < 0.15, implied.mean()
    assert abs(implied.std() - 1.0) < 0.15, implied.std()

    print("KERNEL_OK")
</pallas_src>

<mosaic_0001>
module attributes {stable_mosaic.version = 11 : i64} {
  func.func @_cond_noise_kernel(%arg0: i32, %arg1: i32, %arg2: memref<2xf32, #tpu.memory_space<smem>>, %arg3: memref<2xf32, #tpu.memory_space<smem>>, %arg4: memref<1x8x128xf32, #tpu.memory_space<vmem>>, %arg5: memref<1x8x128xf32, #tpu.memory_space<vmem>>, %arg6: memref<1x8x128xf32, #tpu.memory_space<vmem>>) attributes {dimension_semantics = [#tpu.dimension_semantics<parallel>, #tpu.dimension_semantics<parallel>], iteration_bounds = array<i64: 2, 1>, scalar_prefetch = 2 : i64, scratch_operands = 0 : i64, tpu.core_type = #tpu.core_type<tc>, window_params = [{transform_indices = @transform_0, window_bounds = array<i64: 1, 8, 128>}, {transform_indices = @transform_1, window_bounds = array<i64: 1, 8, 128>}, {transform_indices = @transform_2, window_bounds = array<i64: 1, 8, 128>}]} {
    %0 = arith.index_cast %arg0 : i32 to index
    %1 = memref.load %arg2[%0] : memref<2xf32, #tpu.memory_space<smem>>
    %2 = arith.index_cast %arg0 : i32 to index
    %3 = memref.load %arg3[%2] : memref<2xf32, #tpu.memory_space<smem>>
    %c0 = arith.constant 0 : index
    %c0_0 = arith.constant 0 : index
    %c0_1 = arith.constant 0 : index
    %4 = vector.load %arg4[%c0, %c0_0, %c0_1] : memref<1x8x128xf32, #tpu.memory_space<vmem>>, vector<1x8x128xf32>
    %5 = vector.shape_cast %4 : vector<1x8x128xf32> to vector<8x128xf32>
    %c0_2 = arith.constant 0 : index
    %c0_3 = arith.constant 0 : index
    %c0_4 = arith.constant 0 : index
    %6 = vector.load %arg5[%c0_2, %c0_3, %c0_4] : memref<1x8x128xf32, #tpu.memory_space<vmem>>, vector<1x8x128xf32>
    %7 = vector.shape_cast %6 : vector<1x8x128xf32> to vector<8x128xf32>
    %8 = vector.broadcast %1 : f32 to vector<8x128xf32>
    %9 = arith.mulf %8, %5 : vector<8x128xf32>
    %10 = vector.broadcast %3 : f32 to vector<8x128xf32>
    %11 = arith.mulf %10, %7 : vector<8x128xf32>
    %12 = arith.addf %9, %11 : vector<8x128xf32>
    %c0_5 = arith.constant 0 : index
    %c0_6 = arith.constant 0 : index
    %c0_7 = arith.constant 0 : index
    %13 = vector.load %arg6[%c0_5, %c0_6, %c0_7] : memref<1x8x128xf32, #tpu.memory_space<vmem>>, vector<1x8x128xf32>
    %14 = vector.shape_cast %13 : vector<1x8x128xf32> to vector<8x128xf32>
    %15 = vector.shape_cast %12 : vector<8x128xf32> to vector<1x8x128xf32>
    tpu.vector_store %arg6[%c0_5, %c0_6, %c0_7], %15 {strides = array<i32>} : memref<1x8x128xf32, #tpu.memory_space<vmem>>, vector<1x8x128xf32>,
    return
  }
  func.func @transform_0(%arg0: i32, %arg1: i32, %arg2: memref<2xf32, #tpu.memory_space<smem>>, %arg3: memref<2xf32, #tpu.memory_space<smem>>) -> (i32, i32, i32) {
    %c0_i32 = arith.constant 0 : i32
    %c0_i32_0 = arith.constant 0 : i32
    return %arg0, %arg1, %c0_i32 : i32, i32, i32
  }
  func.func @transform_1(%arg0: i32, %arg1: i32, %arg2: memref<2xf32, #tpu.memory_space<smem>>, %arg3: memref<2xf32, #tpu.memory_space<smem>>) -> (i32, i32, i32) {
    %c0_i32 = arith.constant 0 : i32
    %c0_i32_0 = arith.constant 0 : i32
    return %arg0, %arg1, %c0_i32 : i32, i32, i32
  }
  func.func @transform_2(%arg0: i32, %arg1: i32, %arg2: memref<2xf32, #tpu.memory_space<smem>>, %arg3: memref<2xf32, #tpu.memory_space<smem>>) -> (i32, i32, i32) {
    %c0_i32 = arith.constant 0 : i32
    %c0_i32_0 = arith.constant 0 : i32
    return %arg0, %arg1, %c0_i32 : i32, i32, i32
  }
}

</mosaic_0001>

<bundles_post_ra>
// kernel: tpu_custom_call.1
= control target key start
LH: loop header
LB: loop body
LE: loop exit
PB: predicated region body
PF: predicated region fallthrough
CT: control target
= control target key end

     0   :  { %s604_s15 = smov [#allocation3]   ;;  %s803_s0 = inlined_call_operand.hbm [shape: f32[2], index: 0, kind: input, shape index: {}]   ;;  %s804_s2 = inlined_call_operand.hbm [shape: f32[2,8,128], index: 2, kind: input, shape index: {}]   ;;  %s805_s3 = inlined_call_operand.hbm [shape: f32[2,8,128], index: 3, kind: input, shape index: {}]   ;;  %s806_s4 = inlined_call_operand.hbm [shape: f32[2,8,128], index: 4, kind: output, shape index: {}]   ;;  %s807_s1 = inlined_call_operand.vmem [shape: f32[2], index: 1, kind: input, shape index: {}]  }
   0x1   :  { %10 = dma.hbm_to_smem %s803_s0, 16, %s604_s15, [#allocation2] }
   0x2   :  { %s11_s20 = sshll.u32 %s807_s1, 4  ;;  %s12_s20 = int_to_ptr.vmem [resolvable:$true] %s11_s20 }
   0x3   :  { %s448_s21 = scalar_lea.vmem %s12_s20, 16  ;;  %p453_p1 = scmp.lt.s32.totalorder %s12_s20, %s12_s20 }
   0x4   :  { %p449_p0 = scmp.ne.s32.totalorder %s12_s20, %s448_s21  ;;  %p454_p2 = scmp.lt.s32.totalorder %s448_s21, %s448_s21 }
   0x6   :  { %p455_p3 = por %p454_p2, %p453_p1 }
   0x8   :  { %p456_p4 = pnand %p455_p3, %p449_p0 }
   0xa   :  { %459 = shalt.err (!%p456_p4)  }
   0xb   :  { %s605_s22 = smov [#allocation4]  }
   0xc   :  { %14 = dma.vmem_to_smem %s12_s20, 16, %s605_s22, [#allocation2] }
   0xd   :  { %566 = dma.done.wait [#allocation2], 32 }
   0xe   :  { %567 = vsyncadd [#allocation2], 4294967264 }
   0xf   :  { %16 = sfence }
  0x10   :  { %17 = vsyncpa [#allocation6], 0 }
  0x11   :  { %19 = vsyncpa [#allocation6 + $0x1], 0 }
  0x12   :  { %20 = vsyncpa [#allocation9], 0 }
  0x13   :  { %22 = vsyncpa [#allocation9 + $0x1], 0 }
  0x14   :  { %23 = vsyncpa [#allocation7], 0 }
  0x15   :  { %25 = vsyncpa [#allocation7 + $0x1], 0  ;;  %s640_s0 = smov 0   ;;  %s642_s1 = smov 0  }
  0x16   :  { %s644_s23 = smov 0   ;;  %s646_s24 = smov 0  }
  0x17   :  { %s648_s25 = smov 0   ;;  %s650_s26 = smov 0  }
  0x18 LB: > { %s355_s27 = sadd.s32 4294967295, %s602_s26   ;;  %s356_s28 = sadd.s32 4294967294, %s602_s26   ;;  %s602_s26 = sphi %s650_s26, %s31_s26   ;;  %s598_s25 = sphi %s648_s25, %s819_s25   ;;  %s594_s24 = sphi %s646_s24, %s818_s24   ;;  %s590_s23 = sphi %s644_s23, %s817_s23   ;;  %s586_s1 = sphi %s642_s1, %s816_s1   ;;  %s582_s0 = sphi %s640_s0, %s815_s0  }
  0x19   : > { %s43_s29 = sadd.s32 1, %s598_s25  ;;  %s52_s30 = sadd.s32 1, %s590_s23 }
  0x1a   : > { %p45_p5 = scmp.ge.s32.totalorder %s43_s29, 2  ;;  %p59_p6 = scmp.ne.s32.totalorder %s590_s23, %s586_s1 }
  0x1b   : > { %p60_p7 = scmp.eq.s32.totalorder %s602_s26, 0  ;;  %p65_p8 = scmp.ne.s32.totalorder %s586_s1, %s582_s0 }
  0x1c   : > { %s821_s29 = smov (%p45_p5, %s43_s29), 0  ;;  %p66_p10 = scmp.eq.s32.totalorder %s355_s27, 0 }
  0x1d   : > { %p681_p9 = por %p60_p7, %p59_p6  ;;  %s47_s6 = ssub.s32 %s598_s25, %s821_s29 }
  0x1e   : > { %p119_p11 = scmp.eq.s32.totalorder %s355_s27, 1  ;;  %p50_p12 = scmp.eq.s32.totalorder %s47_s6, 0 }
  0x1f   : > { %p687_p13 = por %p66_p10, %p65_p8  ;;  %p125_p1 = scmp.eq.s32.totalorder %s356_s28, 1 }
  0x20   : > { %p691_p0 = por %p119_p11, %p59_p6  ;;  %p388_p4 = scmp.lt.s32.totalorder %s602_s26, 2 }
  0x21   : > { %s696_s9 = scalar_select %p50_p12, %s590_s23, %s52_s30  }
  0x22   : > { %p698_p2 = por %p125_p1, %p65_p8  ;;  %s705_s11 = sand.u32 1, %s590_s23  }
  0x23   : > { %s359_s12 = sshll.u32 %s705_s11, 3  ;;  %s360_s13 = sshll.u32 %s598_s25, 7 }
  0x24   : > { %s155_s16 = scalar_lea.hbm %s804_s2, %s360_s13  ;;  %s149_s17 = scalar_lea.vmem [#allocation5], %s359_s12 }
  0x25   : > { %s157_s18 = sshll.u32 %s149_s17, 4  ;;  %p714_p5 = pnand %p388_p4, %p681_p9  ;;  %s158_s18 = int_to_ptr.vmem [resolvable:$true] %s157_s18 }
  0x26   : > { %p363_p6 = scmp.ge.s32.totalorder %s602_s26, 1  ;;  %p181_p7 = scmp.lt.s32.totalorder %s602_s26, 3 }
  0x27   : > { %s146_s20 = scalar_lea.sflag [#allocation6], %s705_s11  ;;  %p462_p8 = pneg %p714_p5 }
  0x28   : > { %s473_s21 = scalar_lea.vmem %s158_s18, 128  ;;  %s606_s22 = smov [#allocation5]  }
  0x29   : > { %p474_p10 = scmp.ne.s32.totalorder %s158_s18, %s473_s21  ;;  %s478_s27 = sshll.u32 %s606_s22, 4  ;;  %s479_s27 = int_to_ptr.vmem [resolvable:$false] %s478_s27 }
  0x2a   : > { %s480_s28 = scalar_lea.vmem %s479_s27, 256  ;;  %p481_p9 = scmp.lt.s32.totalorder %s158_s18, %s479_s27 }
  0x2b   : > { %p476_p11 = pnand %p474_p10, %p462_p8  ;;  %p482_p1 = scmp.lt.s32.totalorder %s480_s28, %s473_s21 }
  0x2d   : > { %p477_p12 = pneg %p476_p11  ;;  %p483_p4 = por %p482_p1, %p481_p9 }
  0x2f   : > { %p484_p3 = pnand %p483_p4, %p477_p12 }
  0x31   : > { %487 = shalt.err (!%p484_p3)
}
  0x32   : > { %380 = dma.hbm_to_vmem [thread:$0]  (!%p714_p5), %s155_s16, 128, %s158_s18, %s146_s20  }
  0x33   : > { %p732_p10 = pnand %p363_p6, %p181_p7  ;;  %s174_s14 = scalar_lea.hbm %s805_s3, %s360_s13 }
  0x34   : > { %s168_s15 = scalar_lea.vmem [#allocation8], %s359_s12  ;;  %s165_s21 = scalar_lea.sflag [#allocation9], %s705_s11 }
  0x35   : > { %s176_s17 = sshll.u32 %s168_s15, 4  ;;  %s607_s16 = smov [#allocation8]   ;;  %s177_s17 = int_to_ptr.vmem [resolvable:$true] %s176_s17 }
  0x36   : > { %s501_s22 = scalar_lea.vmem %s177_s17, 128  ;;  %s506_s18 = sshll.u32 %s607_s16, 4  ;;  %s507_s18 = int_to_ptr.vmem [resolvable:$false] %s506_s18 }
  0x37   : > { %p502_p3 = scmp.ne.s32.totalorder %s177_s17, %s501_s22  ;;  %s508_s20 = scalar_lea.vmem %s507_s18, 256 }
  0x38   : > { %p509_p6 = scmp.lt.s32.totalorder %s177_s17, %s507_s18  ;;  %p510_p7 = scmp.lt.s32.totalorder %s508_s20, %s501_s22 }
  0x39   : > { %p504_p11 = pnand %p502_p3, %p462_p8 }
  0x3a   : > { %p511_p9 = por %p510_p7, %p509_p6 }
  0x3b   : > { %p505_p12 = pneg %p504_p11 }
  0x3d   : > { %p512_p1 = pnand %p511_p9, %p505_p12 }
  0x3f   : > { %515 = shalt.err (!%p512_p1)
}
  0x40   : > { %383 = dma.hbm_to_vmem [thread:$0]  (!%p714_p5), %s174_s14, 128, %s177_s17, %s165_s21  }
  0x41   : > { %185 = sbr.rel (%p732_p10) target bundleno = 98 (0x62), region = 28  ;;  %s748_s11 = sand.u32 (!%p732_p10), 1, %s586_s1  }
  0x42   : > { %s364_s12 = sshll.u32 (!%p732_p10), %s748_s11, 3  ;;  %s188_s13 = scalar_lea.sflag (!%p732_p10), [#allocation6], %s748_s11 }
  0x43   : > { %s191_s27 = scalar_lea.vmem (!%p732_p10), [#allocation5], %s364_s12 }
  0x46   : > { %569 = dma.done.wait (%p687_p13), %s188_s13, 128  }
  0x47   : > { %571 = vsyncadd (%p687_p13), %s188_s13, 4294967168  ;;  %s197_s19 = scalar_lea.sflag [#allocation9], %s748_s11  ;;  %s200_s28 = scalar_lea.vmem [#allocation8], %s364_s12 }
  0x48   : > { %573 = dma.done.wait (%p687_p13), %s197_s19, 128  }
  0x49   : > { %575 = vsyncadd (%p687_p13), %s197_s19, 4294967168  ;;  %s226_s30 = sld [smem:[#allocation3 + %s594_s24]]  ;;  %v228_v0 = vld [vmem:[%s191_s27] sm:$0xff]  ;;  %v229_v1 = vld [vmem:[%s200_s28] sm:$0xff]  ;;  %s225_s6 = scalar_lea.vmem [#allocation10], %s364_s12 }
  0x4a   : > { %s227_s5 = sld [smem:[#allocation4 + %s594_s24]]  ;;  %s251_s14 = sshll.u32 %s225_s6, 4  ;;  %s252_s14 = int_to_ptr.vmem [resolvable:$true] %s251_s14 }
  0x4b   : > { %s368_s15 = sshll.u32 %s594_s24, 7  ;;  %s237_s22 = scalar_lea.sflag [#allocation7], %s748_s11 }
  0x4c   : > { %s249_s21 = scalar_lea.hbm %s806_s4, %s368_s15  ;;  %s516_s16 = scalar_lea.vmem %s252_s14, 128 }
  0x4d   : > { %p517_p13 = scmp.ne.s32.totalorder %s252_s14, %s516_s16  ;;  %s608_s18 = smov [#allocation10]  }
  0x4e   : > { %s520_s20 = sshll.u32 %s608_s18, 4  ;;  %s521_s20 = int_to_ptr.vmem [resolvable:$false] %s520_s20 }
  0x4f   : > { %v230_v2 = vstv %s226_s30  ;;  %p518_p5 = pnand %p517_p13, %p691_p0  ;;  %s522_s12 = scalar_lea.vmem %s521_s20, 256 }
  0x50   : > { %v231_v3 = vmul.f32 %v230_v2, %v228_v0  ;;  %v232_v4 = vstv %s227_s5  ;;  %p523_p4 = scmp.lt.s32.totalorder %s252_s14, %s521_s20  ;;  %p524_p10 = scmp.lt.s32.totalorder %s522_s12, %s516_s16 }
  0x51   : > { %v233_v5 = vmul.f32 %v232_v4, %v229_v1  ;;  %p519_p8 = pneg %p518_p5 }
  0x52   : > { %p525_p3 = por %p524_p10, %p523_p4 }
  0x53   : > { %v234_v6 = vadd.f32 %v233_v5, %v231_v3 }
  0x54   : > { %p526_p11 = pnand %p525_p3, %p519_p8 }
  0x55   : > { %235 = vst [vmem:[%s225_s6] sm:$0xff] %v234_v6 }
  0x56   : > { %529 = shalt.err (!%p526_p11)
}
  0x57   : > { %s530_s24 = scalar_lea.hbm %s249_s21, 128  ;;  %s534_s27 = scalar_lea.hbm %s806_s4, 256 }
  0x58   : > { %p531_p12 = scmp.ne.s32.totalorder %s249_s21, %s530_s24  ;;  %p535_p9 = scmp.lt.s32.totalorder %s249_s21, %s806_s4 }
  0x59   : > { %p536_p1 = scmp.lt.s32.totalorder %s534_s27, %s530_s24 }
  0x5a   : > { %p532_p6 = pnand %p531_p12, %p691_p0 }
  0x5b   : > { %p537_p13 = por %p536_p1, %p535_p9 }
  0x5c   : > { %p533_p7 = pneg %p532_p6 }
  0x5e   : > { %p538_p5 = pnand %p537_p13, %p533_p7 }
  0x60   : > { %541 = shalt.err (!%p538_p5)
}
  0x61   : > { %375 = dma.vmem_to_hbm [thread:$0]  (%p691_p0), %s252_s14, 128, %s249_s21, %s237_s22  }
  0x62 PF: > { %s263_s30 = sand.u32 1, %s582_s0   ;;  %p814_p8 = scmp.ge.s32.totalorder %s602_s26, 2 }
  0x63   : > { %s264_s5 = scalar_lea.sflag [#allocation7], %s263_s30 }
  0x64   : > { %p385_p4 = pnand %p814_p8, %p698_p2 }
  0x66   : > { %p386_p10 = pneg %p385_p4 }
  0x68   : > { %577 = dma.done.wait (%p386_p10), %s264_s5, 128  }
  0x69   : > { %579 = vsyncadd (%p386_p10), %s264_s5, 4294967168  ;;  %s31_s26 = sadd.s32 1, %s602_s26   ;;  %s815_s0 = smov %s586_s1 }
  0x6a   : > { %p28_p3 = scmp.ge.s32.totalorder %s31_s26, 4   ;;  %s816_s1 = smov %s590_s23 }
  0x6b   : > { %s817_s23 = smov %s696_s9  ;;  %s818_s24 = smov %s598_s25 }
  0x6c   : > { %s819_s25 = smov %s821_s29  ;;  %30 = sbr.rel (!%p28_p3) target bundleno = 24 (0x18), region = 86 }
  0x71   :  { %269 = vsyncpa [#allocation6], 1 }
  0x72   :  { %271 = vsyncpa [#allocation6 + $0x1], 1 }
  0x73   :  { %272 = vsyncpa [#allocation9], 1 }
  0x74   :  { %274 = vsyncpa [#allocation9 + $0x1], 1 }
  0x75   :  { %275 = vsyncpa [#allocation7], 1 }
  0x76   :  { %277 = vsyncpa [#allocation7 + $0x1], 1 }

</bundles_post_ra>
